<compile_context>
chip_gen: v6e
topology: v6e:2x2x1
jax: 0.10.0
libtpu: 0.0.40
codegen_flags: <defaults>
</compile_context>

<pallas_src>
import math
from functools import partial

import jax
import jax.numpy as jnp
from jax.experimental import pallas as pl
from jax.experimental.pallas import tpu as pltpu


# ---------------------------------------------------------------------------
# Small helpers
# ---------------------------------------------------------------------------
def _round_up(x, m):
    return ((x + m - 1) // m) * m


def _pick_divisor_tile(dim, target, step):
    """Largest multiple of `step` <= target that divides `dim`; else full dim."""
    if dim <= target:
        return dim
    t = (target // step) * step
    while t >= step:
        if dim % t == 0:
            return t
        t -= step
    return dim


def _pick_head_group(num_heads, head_dim, max_lanes=256):
    """Largest divisor g of H with g*D <= max_lanes.

    Packing g heads into one (N, g*D) slab makes the SDPA output store
    lane-dense (128/256 lanes for D=64) and widens every q/k/v DMA row.
    """
    best = 1
    for g in range(1, num_heads + 1):
        if num_heads % g == 0 and g * head_dim <= max_lanes:
            best = g
    return best


def _refined_reciprocal(x):
    """EUP approximate reciprocal + one Newton step (near f32-exact).

    Only applied to (N, 1) softmax denominators, so the refinement is free.
    """
    r = pl.reciprocal(x, approx=True)
    return r * (2.0 - x * r)


# ---------------------------------------------------------------------------
# Tiled linear kernels (weights kept in (out_features, in_features) layout)
# ---------------------------------------------------------------------------
def _linear_kernel(x_ref, w_ref, o_ref, acc_ref):
    @pl.when(pl.program_id(2) == 0)
    def _init():
        acc_ref[...] = jnp.zeros_like(acc_ref)

    # x: (tm, tk), w: (tn, tk) -> contract the K axis of both (no transpose).
    acc_ref[...] += jax.lax.dot_general(
        x_ref[...], w_ref[...],
        dimension_numbers=(((1,), (1,)), ((), ())),
        preferred_element_type=jnp.float32)

    @pl.when(pl.program_id(2) == pl.num_programs(2) - 1)
    def _done():
        o_ref[...] = acc_ref[...].astype(o_ref.dtype)


def _linear_bias_kernel(x_ref, w_ref, b_ref, o_ref, acc_ref):
    @pl.when(pl.program_id(2) == 0)
    def _init():
        acc_ref[...] = jnp.zeros_like(acc_ref)

    acc_ref[...] += jax.lax.dot_general(
        x_ref[...], w_ref[...],
        dimension_numbers=(((1,), (1,)), ((), ())),
        preferred_element_type=jnp.float32)

    @pl.when(pl.program_id(2) == pl.num_programs(2) - 1)
    def _done():
        # Bias add fused into the finalize branch (output tile already resident).
        o_ref[...] = (acc_ref[...] + b_ref[...].astype(jnp.float32)).astype(o_ref.dtype)


def _linear(x2d, w, bias=None, *, tm_target=512, tn_target=512, tk_target=512):
    """y = x2d @ w.T (+ bias).  x2d: (M, K), w: (Nout, K), bias: (Nout,)|None.

    M (= B*N tokens; often awkward like 197*B) is padded up to the tile size so
    the MXU always sees full-height tiles.  Nout/K tiles are divisor-picked
    (channel dims are multiples of 128 in practice).  512-target tiles keep the
    per-step footprint at a few MiB (fits v5e's 16 MiB scoped default and v7x's
    64 MiB physical VMEM) while minimizing redundant x/w re-reads across the
    output grid.
    """
    M, K = x2d.shape
    Nout = w.shape[0]
    itemsize = jnp.dtype(x2d.dtype).itemsize
    m_step = {4: 8, 2: 16, 1: 32}.get(itemsize, 8)   # dtype-aware sublane packing

    tm = min(tm_target, _round_up(M, m_step))
    Mp = _round_up(M, tm)
    if Mp != M:
        x2d = jnp.pad(x2d, ((0, Mp - M), (0, 0)))    # zero rows -> sliced off below

    tn = _pick_divisor_tile(Nout, tn_target, 128)
    tk = _pick_divisor_tile(K, tk_target, 128)
    grid = (Mp // tm, Nout // tn, K // tk)

    # bytes_accessed accounts for the k-loop re-reads of x (per j) and w (per i).
    cost = pl.CostEstimate(
        flops=2 * Mp * K * Nout,
        transcendentals=0,
        bytes_accessed=(Mp * K * grid[1] + K * Nout * grid[0] + Mp * Nout) * itemsize,
    )
    cparams = pltpu.CompilerParams(
        dimension_semantics=("parallel", "parallel", "arbitrary"))
    out_shape = jax.ShapeDtypeStruct((Mp, Nout), x2d.dtype)
    scratch = [pltpu.VMEM((tm, tn), jnp.float32)]

    x_spec = pl.BlockSpec((tm, tk), lambda i, j, k: (i, k))
    w_spec = pl.BlockSpec((tn, tk), lambda i, j, k: (j, k))
    o_spec = pl.BlockSpec((tm, tn), lambda i, j, k: (i, j))

    if bias is None:
        out = pl.pallas_call(
            _linear_kernel,
            out_shape=out_shape,
            grid=grid,
            in_specs=[x_spec, w_spec],
            out_specs=o_spec,
            scratch_shapes=scratch,
            compiler_params=cparams,
            cost_estimate=cost,
        )(x2d, w)
    else:
        b2d = bias.reshape(1, Nout)
        b_spec = pl.BlockSpec((1, tn), lambda i, j, k: (0, j))
        out = pl.pallas_call(
            _linear_bias_kernel,
            out_shape=out_shape,
            grid=grid,
            in_specs=[x_spec, w_spec, b_spec],
            out_specs=o_spec,
            scratch_shapes=scratch,
            compiler_params=cparams,
            cost_estimate=cost,
        )(x2d, w, b2d)

    return out[:M] if Mp != M else out


# ---------------------------------------------------------------------------
# Dense SDPA kernel: one (batch, head-group) per grid step, packed heads
# ---------------------------------------------------------------------------
def _sdpa_dense_kernel(q_ref, k_ref, v_ref, o_ref, *, g, head_dim):
    """q/k/v: (N, g*D) packed head slabs in native dtype.

    Per-head QK^T + softmax as a short unrolled loop; the normalized per-head
    outputs are concatenated into one (N, g*D) slab so the store is lane-dense
    (unmasked vst) instead of g masked 64-lane stores.  The 1/sqrt(D) scale is
    folded into the q rows of w_qkv at weight-load time, so no scaling here.
    """
    outs = []
    for h in range(g):
        lo = h * head_dim
        hi = lo + head_dim
        q_h = q_ref[:, lo:hi]
        k_h = k_ref[:, lo:hi]
        # QK^T without materializing k.T: contract the last axes of both.
        s = jax.lax.dot_general(
            q_h, k_h,
            dimension_numbers=(((1,), (1,)), ((), ())),
            preferred_element_type=jnp.float32)            # (N, N) f32 scores
        m = jnp.max(s, axis=-1, keepdims=True)
        p = jnp.exp(s - m)                                  # f32 exp (v5e-safe)
        denom = jnp.sum(p, axis=-1, keepdims=True)
        # PV with unnormalized weights; normalize the (N, D) output instead of
        # dividing the (N, N) scores.
        o_h = jnp.dot(p.astype(v_ref.dtype), v_ref[:, lo:hi],
                      preferred_element_type=jnp.float32)
        outs.append(o_h * _refined_reciprocal(denom))
    o_ref[...] = jnp.concatenate(outs, axis=-1).astype(o_ref.dtype)


def _sdpa_dense(qkv2d, B, N, C, H, D, dtype):
    g = _pick_head_group(H, D)          # e.g. g=4 for D=64 -> 256-lane slabs
    hg = H // g
    gd = g * D
    # (B*N, 3C) -> (B, N, 3, H/g, g*D): free view, (3, H, D) is trailing/contiguous.
    qkv = qkv2d.reshape(B, N, 3, hg, gd)

    def qkv_spec(sel):
        return pl.BlockSpec((None, N, None, None, gd),
                            lambda b, h, s=sel: (b, 0, s, h, 0))

    itemsize = jnp.dtype(dtype).itemsize
    cost = pl.CostEstimate(
        flops=4 * B * H * N * N * D,          # QK^T + PV
        transcendentals=B * H * N * N,        # exp
        bytes_accessed=(3 * B * N * C + B * N * C) * itemsize)

    cparams = dict(dimension_semantics=("parallel", "parallel"))
    # Dense path keeps ~2 live (N, N) f32 temps per head plus pipelined
    # q/k/v/out blocks; raise the scoped VMEM limit (16 MiB default on v5e)
    # once that stops fitting.  64 MiB <= physical VMEM on every generation.
    if N >= 512:
        cparams["vmem_limit_bytes"] = 64 * 1024 * 1024

    out = pl.pallas_call(
        partial(_sdpa_dense_kernel, g=g, head_dim=D),
        out_shape=jax.ShapeDtypeStruct((B, N, hg, gd), dtype),
        grid=(B, hg),                   # both axes parallel -> megacore-shardable
        in_specs=[qkv_spec(0), qkv_spec(1), qkv_spec(2)],
        out_specs=pl.BlockSpec((None, N, None, gd), lambda b, h: (b, 0, h, 0)),
        compiler_params=pltpu.CompilerParams(**cparams),
        cost_estimate=cost,
    )(qkv, qkv, qkv)
    # (B, N, H/g, g*D) -> (B*N, C): trailing dims contiguous, head order preserved.
    return out.reshape(B * N, C)


# ---------------------------------------------------------------------------
# Flash / online-softmax SDPA for long sequences (bounded O(N*D) VMEM)
# ---------------------------------------------------------------------------
_FLASH_SEQ_THRESHOLD = 1024     # dense (N, N) f32 scores stop fitting comfortably
_FLASH_KV_TILE = 512


def _sdpa_flash_kernel(q_ref, k_ref, v_ref, o_ref, m_sc, l_sc, acc_sc, *,
                       n_real, tkv):
    kv = pl.program_id(2)

    @pl.when(kv == 0)
    def _init():
        m_sc[...] = jnp.full_like(m_sc, -jnp.inf)
        l_sc[...] = jnp.zeros_like(l_sc)
        acc_sc[...] = jnp.zeros_like(acc_sc)

    s = jax.lax.dot_general(
        q_ref[...], k_ref[...],
        dimension_numbers=(((1,), (1,)), ((), ())),
        preferred_element_type=jnp.float32)                # (Np, tkv)
    # Mask padded key columns (N was rounded up to a multiple of tkv).
    col = kv * tkv + jax.lax.broadcasted_iota(jnp.int32, s.shape, 1)
    s = jnp.where(col < n_real, s, -jnp.inf)

    m_prev = m_sc[...]
    m_new = jnp.maximum(m_prev, jnp.max(s, axis=-1, keepdims=True))
    alpha = jnp.exp(m_prev - m_new)
    p = jnp.exp(s - m_new)
    l_sc[...] = alpha * l_sc[...] + jnp.sum(p, axis=-1, keepdims=True)
    acc_sc[...] = alpha * acc_sc[...] + jnp.dot(
        p.astype(v_ref.dtype), v_ref[...], preferred_element_type=jnp.float32)
    m_sc[...] = m_new

    @pl.when(kv == pl.num_programs(2) - 1)
    def _fin():
        o_ref[...] = (acc_sc[...] * _refined_reciprocal(l_sc[...])).astype(o_ref.dtype)


def _sdpa_flash(qkv2d, B, N, C, H, D, dtype, *, tkv=_FLASH_KV_TILE):
    # TODO(synk): pack g heads into the flash path too (same (N, g*D) slab trick
    # as the dense kernel) for lane-dense stores at long N.
    Np = _round_up(N, tkv)
    qkv = qkv2d.reshape(B, N, 3, H, D)
    if Np != N:
        qkv = jnp.pad(qkv, ((0, 0), (0, Np - N), (0, 0), (0, 0), (0, 0)))

    itemsize = jnp.dtype(dtype).itemsize
    cost = pl.CostEstimate(
        flops=4 * B * H * Np * Np * D,
        transcendentals=B * H * Np * Np,
        bytes_accessed=4 * B * Np * C * itemsize)

    out = pl.pallas_call(
        partial(_sdpa_flash_kernel, n_real=N, tkv=tkv),
        out_shape=jax.ShapeDtypeStruct((B, Np, H, D), dtype),
        grid=(B, H, Np // tkv),
        in_specs=[
            pl.BlockSpec((None, Np, None, None, D), lambda b, h, k: (b, 0, 0, h, 0)),
            pl.BlockSpec((None, tkv, None, None, D), lambda b, h, k: (b, k, 1, h, 0)),
            pl.BlockSpec((None, tkv, None, None, D), lambda b, h, k: (b, k, 2, h, 0)),
        ],
        out_specs=pl.BlockSpec((None, Np, None, D), lambda b, h, k: (b, 0, h, 0)),
        scratch_shapes=[pltpu.VMEM((Np, 1), jnp.float32),
                        pltpu.VMEM((Np, 1), jnp.float32),
                        pltpu.VMEM((Np, D), jnp.float32)],
        compiler_params=pltpu.CompilerParams(
            dimension_semantics=("parallel", "parallel", "arbitrary")),
        cost_estimate=cost,
    )(qkv, qkv, qkv)
    if Np != N:
        out = out[:, :N]
    return out.reshape(B * N, C)


# ---------------------------------------------------------------------------
# Weight prep + forward pass
# ---------------------------------------------------------------------------
def prepare_qkv_weight(w_qkv, dim, num_heads):
    """One-time weight-load transform: fold 1/sqrt(head_dim) into the q rows
    (the first `dim` output features) of the qkv weight, so the SDPA kernel
    never spends per-step VPU multiplies on scaling q."""
    head_dim = dim // num_heads
    scale = 1.0 / math.sqrt(head_dim)
    return w_qkv.at[:dim, :].multiply(jnp.asarray(scale, w_qkv.dtype))


def attention_forward(x, w_qkv_scaled, w_proj, b_proj, num_heads):
    """DINOv2 Attention forward.  x: (B, N, C); weights in PyTorch
    (out_features, in_features) layout.  `w_qkv_scaled` must come from
    `prepare_qkv_weight` (1/sqrt(D) pre-folded into the q rows).
    attn_drop / proj_drop are p=0.0 (identity) and not materialized."""
    B, N, C = x.shape
    H = num_heads
    assert C % H == 0, "dim must be divisible by num_heads"
    D = C // H

    # ---- QKV projection (tiled Pallas matmul, padded-M grid) ----
    qkv2d = _linear(x.reshape(B * N, C), w_qkv_scaled)        # (B*N, 3C)

    # ---- SDPA: dense packed-head kernel, or flash for long sequences ----
    if N > _FLASH_SEQ_THRESHOLD:
        attn2d = _sdpa_flash(qkv2d, B, N, C, H, D, x.dtype)   # (B*N, C)
    else:
        attn2d = _sdpa_dense(qkv2d, B, N, C, H, D, x.dtype)   # (B*N, C)

    # ---- output projection with fused bias ----
    out = _linear(attn2d, w_proj, b_proj)                     # (B*N, C)
    return out.reshape(B, N, C)


# ---------------------------------------------------------------------------
# Pure-JAX reference (correctness sanity check)
# ---------------------------------------------------------------------------
def attention_reference(x, w_qkv, w_proj, b_proj, num_heads):
    B, N, C = x.shape
    H = num_heads
    D = C // H
    qkv = x @ w_qkv.T                                              # (B, N, 3C)
    qkv = qkv.reshape(B, N, 3, H, D).transpose(2, 0, 3, 1, 4)      # (3, B, H, N, D)
    q, k, v = qkv[0], qkv[1], qkv[2]
    scores = jnp.einsum("bhnd,bhmd->bhnm", q, k) / math.sqrt(D)
    p = jax.nn.softmax(scores, axis=-1)
    o = jnp.einsum("bhnm,bhmd->bhnd", p, v)                        # (B, H, N, D)
    o = o.transpose(0, 2, 1, 3).reshape(B, N, C)
    return o @ w_proj.T + b_proj


# ---------------------------------------------------------------------------
# Main
# ---------------------------------------------------------------------------
if __name__ == "__main__":
    # Two small configs: the second (N=13) exercises the padded-M linear path
    # that real DINOv2 token counts (N=197, prime) hit.
    configs = [
        dict(B=2, N=8, C=32, num_heads=8),
        dict(B=2, N=13, C=32, num_heads=4),
    ]

    key = jax.random.PRNGKey(0)
    for cfg in configs:
        B, N, C, num_heads = cfg["B"], cfg["N"], cfg["C"], cfg["num_heads"]
        key, k_x, k_qkv, k_proj, k_bias = jax.random.split(key, 5)

        x = jax.random.normal(k_x, (B, N, C), dtype=jnp.float32)
        # nn.Linear(dim, dim*3, bias=False): weight shape (3C, C)
        w_qkv = jax.random.normal(k_qkv, (3 * C, C), dtype=jnp.float32) * 0.05
        # nn.Linear(dim, dim, bias=True): weight (C, C), bias (C,)
        w_proj = jax.random.normal(k_proj, (C, C), dtype=jnp.float32) * 0.05
        b_proj = jax.random.normal(k_bias, (C,), dtype=jnp.float32) * 0.05

        # One-time fold of 1/sqrt(head_dim) into the q rows of the qkv weight.
        w_qkv_scaled = prepare_qkv_weight(w_qkv, C, num_heads)

        out = attention_forward(x, w_qkv_scaled, w_proj, b_proj, num_heads)
        out = jax.block_until_ready(out)

        ref = attention_reference(x, w_qkv, w_proj, b_proj, num_heads)
        if not jnp.allclose(out, ref, rtol=1e-3, atol=1e-3):
            raise AssertionError(
                f"Pallas attention mismatch vs. reference for config {cfg}")

    print("KERNEL_OK")
</pallas_src>

<mosaic_0001>
module attributes {stable_mosaic.version = 11 : i64} {
  func.func @_linear_kernel(%arg0: i32, %arg1: i32, %arg2: i32, %arg3: memref<16x32xf32, #tpu.memory_space<vmem>>, %arg4: memref<96x32xf32, #tpu.memory_space<vmem>>, %arg5: memref<16x96xf32, #tpu.memory_space<vmem>>, %arg6: memref<16x96xf32, #tpu.memory_space<vmem>>) attributes {dimension_semantics = [#tpu.dimension_semantics<parallel>, #tpu.dimension_semantics<parallel>, #tpu.dimension_semantics<arbitrary>], iteration_bounds = array<i64: 1, 1, 1>, scalar_prefetch = 0 : i64, scratch_operands = 1 : i64, tpu.core_type = #tpu.core_type<tc>, window_params = [{transform_indices = @transform_0, window_bounds = array<i64: 16, 32>}, {transform_indices = @transform_1, window_bounds = array<i64: 96, 32>}, {transform_indices = @transform_2, window_bounds = array<i64: 16, 96>}]} {
    %c0_i32 = arith.constant 0 : i32
    %0 = arith.cmpi eq, %arg2, %c0_i32 : i32
    %1 = arith.extui %0 : i1 to i32
    %c0_i32_0 = arith.constant 0 : i32
    %2 = arith.cmpi ne, %1, %c0_i32_0 : i32
    scf.if %2 {
      %cst_10 = arith.constant 0.000000e+00 : f32
      %12 = vector.broadcast %cst_10 : f32 to vector<16x96xf32>
      %c0_11 = arith.constant 0 : index
      %c0_12 = arith.constant 0 : index
      %13 = vector.load %arg6[%c0_11, %c0_12] : memref<16x96xf32, #tpu.memory_space<vmem>>, vector<16x96xf32>
      tpu.vector_store %arg6[%c0_11, %c0_12], %12 {strides = array<i32>} : memref<16x96xf32, #tpu.memory_space<vmem>>, vector<16x96xf32>,
    } else {
    }
    %c0 = arith.constant 0 : index
    %c0_1 = arith.constant 0 : index
    %3 = vector.load %arg6[%c0, %c0_1] : memref<16x96xf32, #tpu.memory_space<vmem>>, vector<16x96xf32>
    %c0_2 = arith.constant 0 : index
    %c0_3 = arith.constant 0 : index
    %4 = vector.load %arg3[%c0_2, %c0_3] : memref<16x32xf32, #tpu.memory_space<vmem>>, vector<16x32xf32>
    %c0_4 = arith.constant 0 : index
    %c0_5 = arith.constant 0 : index
    %5 = vector.load %arg4[%c0_4, %c0_5] : memref<96x32xf32, #tpu.memory_space<vmem>>, vector<96x32xf32>
    %cst = arith.constant dense<0.000000e+00> : vector<16x96xf32>
    %6 = tpu.matmul %4, %5, %cst {dimension_numbers = #tpu.dot_dimension_numbers<[1], [1], [0], [0], [0, 0, 1, 0], [], []>} : vector<16x32xf32>, vector<96x32xf32>, vector<16x96xf32> -> vector<16x96xf32>
    %7 = arith.addf %3, %6 : vector<16x96xf32>
    %c0_6 = arith.constant 0 : index
    %c0_7 = arith.constant 0 : index
    %8 = vector.load %arg6[%c0_6, %c0_7] : memref<16x96xf32, #tpu.memory_space<vmem>>, vector<16x96xf32>
    tpu.vector_store %arg6[%c0_6, %c0_7], %7 {strides = array<i32>} : memref<16x96xf32, #tpu.memory_space<vmem>>, vector<16x96xf32>,
    %c0_i32_8 = arith.constant 0 : i32
    %9 = arith.cmpi eq, %arg2, %c0_i32_8 : i32
    %10 = arith.extui %9 : i1 to i32
    %c0_i32_9 = arith.constant 0 : i32
    %11 = arith.cmpi ne, %10, %c0_i32_9 : i32
    scf.if %11 {
      %c0_10 = arith.constant 0 : index
      %c0_11 = arith.constant 0 : index
      %12 = vector.load %arg6[%c0_10, %c0_11] : memref<16x96xf32, #tpu.memory_space<vmem>>, vector<16x96xf32>
      %c0_12 = arith.constant 0 : index
      %c0_13 = arith.constant 0 : index
      %13 = vector.load %arg5[%c0_12, %c0_13] : memref<16x96xf32, #tpu.memory_space<vmem>>, vector<16x96xf32>
      tpu.vector_store %arg5[%c0_12, %c0_13], %12 {strides = array<i32>} : memref<16x96xf32, #tpu.memory_space<vmem>>, vector<16x96xf32>,
    } else {
    }
    return
  }
  func.func @transform_0(%arg0: i32, %arg1: i32, %arg2: i32) -> (i32, i32) {
    %c0_i32 = arith.constant 0 : i32
    return %arg0, %arg2 : i32, i32
  }
  func.func @transform_1(%arg0: i32, %arg1: i32, %arg2: i32) -> (i32, i32) {
    %c0_i32 = arith.constant 0 : i32
    return %arg1, %arg2 : i32, i32
  }
  func.func @transform_2(%arg0: i32, %arg1: i32, %arg2: i32) -> (i32, i32) {
    %c0_i32 = arith.constant 0 : i32
    return %arg0, %arg1 : i32, i32
  }
}

</mosaic_0001>

<bundles_post_ra>
// kernel: tpu_custom_call.1
= control target key start
LH: loop header
LB: loop body
LE: loop exit
PB: predicated region body
PF: predicated region fallthrough
CT: control target
= control target key end

     0   :  { %vm35_vm0 = vcmask 261120   ;;  %vm16_vm1 = vcmask 785408   ;;  %v262_v2 = vmov 0.0   ;;  %s358_s0 = inlined_call_operand.vmem [shape: f32[16,32], index: 0, kind: input, shape index: {}]   ;;  %s359_s1 = inlined_call_operand.vmem [shape: f32[96,32], index: 1, kind: input, shape index: {}]   ;;  %s360_s2 = inlined_call_operand.hbm [shape: f32[16,96], index: 2, kind: output, shape index: {}]  }
   0x1   :  { %v34_v0 = vld [vmem:[%s359_s1 + $0x58] sm:$0xff]  ;;  %v33_v1 = vld [vmem:[%s359_s1 + $0x50] sm:$0xff]  ;;  %18 = vst.msk [vmem:[#allocation2 + $0x8] sm:$0xff] %vm16_vm1, %v262_v2  ;;  %17 = vst.msk [vmem:[#allocation2] sm:$0xff] %vm16_vm1, %v262_v2 }
   0x2   :  { %209 = vmatprep.subr.msk.mxu0 %vm35_vm0, %v34_v0  ;;  %v32_v3 = vld [vmem:[%s359_s1 + $0x48] sm:$0xff]  ;;  %v21_v4 = vld [vmem:[%s358_s0] sm:$0xff] }
   0x3   :  { %210 = vmatpush3.xpose.msk.msra.mxu0 %vm35_vm0, %v34_v0 }
   0x4   :  { %211 = vmatprep.subr.msk.mxu0 %vm35_vm0, %v33_v1 }
   0x5   :  { %7 = vsyncpa [#allocation4], 0  ;;  %233 = vmatprep.mubr.msk.f32.mxu0 %vm35_vm0, %v21_v4  ;;  %v31_v5 = vld [vmem:[%s359_s1 + $0x40] sm:$0xff]  ;;  %v30_v6 = vld [vmem:[%s359_s1 + $0x38] sm:$0xff] }
   0x6   :  { %v29_v7 = vld [vmem:[%s359_s1 + $0x30] sm:$0xff]  ;;  %v28_v8 = vld [vmem:[%s359_s1 + $0x28] sm:$0xff]  ;;  %v27_v9 = vld [vmem:[%s359_s1 + $0x20] sm:$0xff] }
   0x7   :  { %212 = vmatpush3.xpose.msk.msra.mxu0 %vm35_vm0, %v33_v1  ;;  %v26_v10 = vld [vmem:[%s359_s1 + $0x18] sm:$0xff]  ;;  %v25_v11 = vld [vmem:[%s359_s1 + $0x10] sm:$0xff]  ;;  %v24_v12 = vld [vmem:[%s359_s1 + $0x8] sm:$0xff] }
   0x8   :  { %213 = vmatprep.subr.msk.mxu0 %vm35_vm0, %v32_v3  ;;  %v23_v13 = vld [vmem:[%s359_s1] sm:$0xff]  ;;  %v22_v14 = vld [vmem:[%s358_s0 + $0x8] sm:$0xff]  ;;  %s263_s1 = smov [#allocation3]  }
   0x9   :  { %v20_v15 = vld [vmem:[#allocation2 + $0x8] sm:$0xff]  ;;  %v19_v17 = vld [vmem:[#allocation2] sm:$0xff]  ;;  %s170_s9 = sshll.u32 %s263_s1, 4  ;;  %s171_s9 = int_to_ptr.vmem [resolvable:$true] %s170_s9 }
   0xa   :  { %s240_s0 = scalar_lea.vmem %s171_s9, 256  ;;  %p245_p1 = scmp.lt.s32.totalorder %s171_s9, %s171_s9 }
   0xb   :  { %214 = vmatpush3.xpose.msk.msra.mxu0 %vm35_vm0, %v32_v3  ;;  %p241_p0 = scmp.ne.s32.totalorder %s171_s9, %s240_s0  ;;  %p246_p2 = scmp.lt.s32.totalorder %s240_s0, %s240_s0 }
   0xc   :  { %215 = vmatprep.subr.msk.mxu0 %vm35_vm0, %v31_v5 }
   0xd   :  { %p247_p3 = por %p246_p2, %p245_p1 }
   0xf   :  { %216 = vmatpush3.xpose.msk.msra.mxu0 %vm35_vm0, %v31_v5  ;;  %p248_p4 = pnand %p247_p3, %p241_p0 }
  0x10   :  { %217 = vmatprep.subr.msk.mxu0 %vm35_vm0, %v30_v6 }
  0x13   :  { %218 = vmatpush3.xpose.msk.msra.mxu0 %vm35_vm0, %v30_v6 }
  0x14   :  { %219 = vmatprep.subr.msk.mxu0 %vm35_vm0, %v29_v7 }
  0x17   :  { %220 = vmatpush3.xpose.msk.msra.mxu0 %vm35_vm0, %v29_v7 }
  0x18   :  { %221 = vmatprep.subr.msk.mxu0 %vm35_vm0, %v28_v8 }
  0x1b   :  { %222 = vmatpush3.xpose.msk.msra.mxu0 %vm35_vm0, %v28_v8 }
  0x1c   :  { %223 = vmatprep.subr.msk.mxu0 %vm35_vm0, %v27_v9 }
  0x1f   :  { %224 = vmatpush3.xpose.msk.msra.mxu0 %vm35_vm0, %v27_v9 }
  0x20   :  { %225 = vmatprep.subr.msk.mxu0 %vm35_vm0, %v26_v10 }
  0x23   :  { %226 = vmatpush3.xpose.msk.msra.mxu0 %vm35_vm0, %v26_v10 }
  0x24   :  { %227 = vmatprep.subr.msk.mxu0 %vm35_vm0, %v25_v11 }
  0x27   :  { %228 = vmatpush3.xpose.msk.msra.mxu0 %vm35_vm0, %v25_v11 }
  0x28   :  { %229 = vmatprep.subr.msk.mxu0 %vm35_vm0, %v24_v12 }
  0x2b   :  { %230 = vmatpush3.xpose.msk.msra.mxu0 %vm35_vm0, %v24_v12 }
  0x2c   :  { %231 = vmatprep.subr.msk.mxu0 %vm35_vm0, %v23_v13 }
  0x2f   :  { %232 = vmatpush3.xpose.msk.msra.mxu0 %vm35_vm0, %v23_v13 }
  0x32   :  { %234 = vmatmul.mubr.msk.f32.vlgmr.msra.gmra.mxu0 %vm35_vm0, %v22_v14 }
  0xf2   :  { %v235_v16 = vpop.f32.mrf.mxu0 }
  0xf3   :  { %v154_v18 = vadd.f32 %v235_v16, %v20_v15 }
  0xf4   :  { %v144_v19 = vpop.f32.mrf.mxu0 }
  0xf5   :  { %157 = vst.msk [vmem:[#allocation2 + $0x8] sm:$0xff] %vm16_vm1, %v154_v18  ;;  %v153_v20 = vadd.f32 %v144_v19, %v19_v17 }
  0xf7   :  { %156 = vst.msk [vmem:[#allocation2] sm:$0xff] %vm16_vm1, %v153_v20 }
  0xfc   :  { %v162_v21 = vld [vmem:[#allocation2 + $0x8] sm:$0xff] }
  0xfd   :  { %164 = vst.msk [vmem:[#allocation3 + $0x8] sm:$0xff] %vm16_vm1, %v162_v21 }
  0xfe   :  { %v161_v22 = vld [vmem:[#allocation2] sm:$0xff] }
  0xff   :  { %163 = vst.msk [vmem:[#allocation3] sm:$0xff] %vm16_vm1, %v161_v22 }
 0x100   :  { %251 = shalt.err (!%p248_p4)
}
 0x101   :  { %s264_s10 = smov 128   ;;  %s265_s11 = smov 8  }
 0x102   :  { %176 = dma.vmem_to_hbm [thread:$0]  %s171_s9, 256, %s360_s2, [#allocation4], %s264_s10, %s264_s10, %s265_s11  }
 0x103   :  { %260 = dma.done.wait [#allocation4], 256  }
 0x104   :  { %261 = vsyncadd [#allocation4], 4294967040 }
 0x105   :  { %180 = vsyncpa [#allocation4], 1 }

</bundles_post_ra>
